<compile_context>
chip_gen: v5e
topology: v5e:2x2
jax: 0.10.0
libtpu: 0.0.40
codegen_flags: <defaults>
</compile_context>

<pallas_src>
import jax
import jax.numpy as jnp
from jax.experimental import pallas as pl
from jax.experimental.pallas import tpu as pltpu

K_DEFAULT = 128
EDGE_TYPES = 512 * 3

# The PyTorch module hard-codes pi = 3.14159 (not math.pi); keep it bit-faithful.
_PI = 3.14159


def _gaussian_kernel(xmb_ref, c_ref, o_ref):
    # xmb_ref : (tm, 3) f32  columns = [x, mul, bias] per row
    # c_ref   : (3, K)  f32  rows    = [a, b, coef]
    #             a = 1/(std*sqrt(2)); b = -mean*a; coef = 1/(std*sqrt(2*pi))
    # o_ref   : (tm, K)      dtype = means.weight dtype (type_as)
    xmb = xmb_ref[...]
    v = xmb[:, 1:2] * xmb[:, 0:1] + xmb[:, 2:3]        # (tm, 1) fused per-row FMA
    a = c_ref[0:1, :]
    b = c_ref[1:2, :]
    coef = c_ref[2:3, :]
    z = v * a + b                                      # (tm, K) f32 broadcast FMA
    if o_ref.dtype == jnp.bfloat16:
        # bf16 EUP/VPU chain (v6e/v7x): doubles exp throughput, halves stores.
        zb = z.astype(jnp.bfloat16)
        o_ref[...] = jnp.exp(-(zb * zb)) * coef.astype(jnp.bfloat16)
    else:
        o_ref[...] = (jnp.exp(-(z * z)) * coef).astype(o_ref.dtype)


def _round_up(n, m):
    return ((n + m - 1) // m) * m


def gaussian_layer(x, edge_types, means_w, stds_w, mul_w, bias_w, *, tm=8192):
    """x: (B, N, N) float; edge_types: (B, N, N, T) int.

    Returns (B, N, N, K) in means_w.dtype (matches `type_as(self.means.weight)`).
    """
    B, N, _ = x.shape
    Kdim = means_w.shape[1]
    out_dtype = means_w.dtype
    M = B * N * N

    # --- glue: dim-1 embedding gathers + sum over the edge-type axis ---------
    # TODO(synk): the data-dependent embedding gather stays in XLA; it is a
    # negligible fraction of the HBM traffic vs. the (M, K) output.
    mul = jnp.take(mul_w[:, 0], edge_types, axis=0).sum(axis=-1)     # (B, N, N)
    bias = jnp.take(bias_w[:, 0], edge_types, axis=0).sum(axis=-1)   # (B, N, N)
    xmb = jnp.stack(
        [x.reshape(M).astype(jnp.float32),
         mul.reshape(M).astype(jnp.float32),
         bias.reshape(M).astype(jnp.float32)], axis=-1)              # (M, 3)

    # --- precompute per-gaussian constants (3*K scalars, done once) ----------
    mean = means_w.reshape(1, Kdim).astype(jnp.float32)
    std = jnp.abs(stds_w.reshape(1, Kdim).astype(jnp.float32)) + 0.01
    inv_std = 1.0 / std
    a = inv_std * (0.5 ** 0.5)                 # 1/(std*sqrt(2))
    b = -mean * a                              # -mean/(std*sqrt(2))
    coef = inv_std / ((2.0 * _PI) ** 0.5)      # 1/(std*sqrt(2*pi))
    consts = jnp.concatenate([a, b, coef], axis=0)                   # (3, K)

    # --- row tiling -----------------------------------------------------------
    # Sublane alignment: 8 rows for 4-byte output, 16 for 2-byte, 32 for 1-byte
    # (keeps packed, unmasked stores except on the final partial block).
    itemsize = jnp.dtype(out_dtype).itemsize
    row_align = {4: 8, 2: 16, 1: 32}.get(itemsize, 8)
    tm_eff = max(row_align, min(tm, _round_up(M, row_align)))
    if M > row_align:
        # Keep the grid >= 2 steps so "parallel" can feed both v7x TensorCores.
        tm_eff = min(tm_eff, _round_up(pl.cdiv(M, 2), row_align))
    tm_eff = _round_up(tm_eff, row_align)

    grid = (pl.cdiv(M, tm_eff),)

    out = pl.pallas_call(
        _gaussian_kernel,
        out_shape=jax.ShapeDtypeStruct((M, Kdim), out_dtype),
        grid_spec=pltpu.PrefetchScalarGridSpec(
            num_scalar_prefetch=0,
            grid=grid,
            in_specs=[
                pl.BlockSpec((tm_eff, 3), lambda i: (i, 0)),
                pl.BlockSpec((3, Kdim), lambda i: (0, 0)),
            ],
            out_specs=pl.BlockSpec((tm_eff, Kdim), lambda i: (i, 0)),
        ),
        compiler_params=pltpu.CompilerParams(
            dimension_semantics=("parallel",),
            # VMEM: input block is lane-padded to 128 lanes -> tm*512 B/buffer,
            # same as the output block.  Double-buffered in+out at tm=8192 f32
            # ~= 16 MiB; 32 MiB gives headroom yet stays at half of v7x's
            # 64 MiB physical VMEM (the old 64 MiB request was the whole chip).
            vmem_limit_bytes=32 << 20,
        ),
    )(xmb, consts)

    return out.reshape(B, N, N, Kdim)


def _reference(x, edge_types, means_w, stds_w, mul_w, bias_w):
    mul = jnp.take(mul_w, edge_types, axis=0).sum(axis=-2)    # (B,N,N,1)
    bias = jnp.take(bias_w, edge_types, axis=0).sum(axis=-2)  # (B,N,N,1)
    y = mul * x[..., None] + bias                             # (B,N,N,1)
    y = jnp.broadcast_to(
        y, y.shape[:-1] + (means_w.shape[1],)).astype(jnp.float32)
    mean = means_w.reshape(-1).astype(jnp.float32)
    std = jnp.abs(stds_w.reshape(-1).astype(jnp.float32)) + 0.01
    a = (2.0 * _PI) ** 0.5
    return (jnp.exp(-0.5 * ((y - mean) / std) ** 2) / (a * std)).astype(
        means_w.dtype)


if __name__ == "__main__":
    key = jax.random.PRNGKey(0)
    k_means, k_stds, k_x, k_et = jax.random.split(key, 4)

    B, N, T, K = 2, 8, 3, K_DEFAULT

    # Deterministic parameter init mirroring the PyTorch __init__:
    #   means, stds ~ U(0, 3);  mul.weight = 1;  bias.weight = 0
    means_w = jax.random.uniform(k_means, (1, K), jnp.float32, 0.0, 3.0)
    stds_w = jax.random.uniform(k_stds, (1, K), jnp.float32, 0.0, 3.0)
    mul_w = jnp.ones((EDGE_TYPES, 1), jnp.float32)
    bias_w = jnp.zeros((EDGE_TYPES, 1), jnp.float32)

    # Example inputs: pairwise distances x (B,N,N), edge types (B,N,N,T).
    x = jax.random.uniform(k_x, (B, N, N), jnp.float32, 0.0, 5.0)
    edge_types = jax.random.randint(k_et, (B, N, N, T), 0, EDGE_TYPES, jnp.int32)

    # --- f32 parameters -> f32 output, f32 in-kernel math ---------------------
    out = gaussian_layer(x, edge_types, means_w, stds_w, mul_w, bias_w)
    out = jax.block_until_ready(out)
    ref = _reference(x, edge_types, means_w, stds_w, mul_w, bias_w)
    assert out.shape == (B, N, N, K), out.shape
    assert out.dtype == means_w.dtype, out.dtype
    assert jnp.allclose(out, ref, atol=1e-5, rtol=1e-5), float(
        jnp.abs(out - ref).max())

    # --- bf16 parameters -> bf16 output + bf16 EUP path (type_as) -------------
    # Non-trivial mul/bias weights to exercise the in-kernel fused FMA.
    k_mul, k_bias = jax.random.split(jax.random.fold_in(key, 1), 2)
    mul_w2 = 1.0 + 0.05 * jax.random.normal(k_mul, (EDGE_TYPES, 1), jnp.float32)
    bias_w2 = 0.05 * jax.random.normal(k_bias, (EDGE_TYPES, 1), jnp.float32)
    means_bf = means_w.astype(jnp.bfloat16)
    stds_bf = stds_w.astype(jnp.bfloat16)

    out_bf = gaussian_layer(x, edge_types, means_bf, stds_bf, mul_w2, bias_w2)
    out_bf = jax.block_until_ready(out_bf)
    ref_bf = _reference(x, edge_types, means_bf, stds_bf, mul_w2, bias_w2)
    assert out_bf.shape == (B, N, N, K), out_bf.shape
    assert out_bf.dtype == jnp.bfloat16, out_bf.dtype
    # bf16-level tolerance: kernel runs the exp/scale chain in bf16.
    assert jnp.allclose(out_bf.astype(jnp.float32), ref_bf.astype(jnp.float32),
                        atol=2e-2, rtol=6e-2), float(
        jnp.abs(out_bf.astype(jnp.float32) - ref_bf.astype(jnp.float32)).max())

    print("KERNEL_OK")
</pallas_src>

<mosaic_0001>
module attributes {stable_mosaic.version = 11 : i64} {
  func.func @_gaussian_kernel(%arg0: i32, %arg1: memref<64x3xf32, #tpu.memory_space<vmem>>, %arg2: memref<3x128xf32, #tpu.memory_space<vmem>>, %arg3: memref<64x128xf32, #tpu.memory_space<vmem>>) attributes {dimension_semantics = [#tpu.dimension_semantics<parallel>], iteration_bounds = array<i64: 2>, scalar_prefetch = 0 : i64, scratch_operands = 0 : i64, tpu.core_type = #tpu.core_type<tc>, window_params = [{transform_indices = @transform_0, window_bounds = array<i64: 64, 3>}, {pipeline_mode = #tpu.pipeline_mode<synchronous>, transform_indices = @transform_1, window_bounds = array<i64: 3, 128>}, {transform_indices = @transform_2, window_bounds = array<i64: 64, 128>}]} {
    %c0 = arith.constant 0 : index
    %c0_0 = arith.constant 0 : index
    %0 = vector.load %arg1[%c0, %c0_0] : memref<64x3xf32, #tpu.memory_space<vmem>>, vector<64x3xf32>
    %1 = vector.extract_strided_slice %0 {offsets = [0, 1], sizes = [64, 1], strides = [1, 1]} : vector<64x3xf32> to vector<64x1xf32>
    %2 = vector.extract_strided_slice %0 {offsets = [0, 0], sizes = [64, 1], strides = [1, 1]} : vector<64x3xf32> to vector<64x1xf32>
    %3 = arith.mulf %1, %2 : vector<64x1xf32>
    %4 = vector.extract_strided_slice %0 {offsets = [0, 2], sizes = [64, 1], strides = [1, 1]} : vector<64x3xf32> to vector<64x1xf32>
    %5 = arith.addf %3, %4 : vector<64x1xf32>
    %c0_1 = arith.constant 0 : index
    %c0_2 = arith.constant 0 : index
    %6 = vector.load %arg2[%c0_1, %c0_2] : memref<3x128xf32, #tpu.memory_space<vmem>>, vector<1x128xf32>
    %c1 = arith.constant 1 : index
    %c0_3 = arith.constant 0 : index
    %7 = vector.load %arg2[%c1, %c0_3] : memref<3x128xf32, #tpu.memory_space<vmem>>, vector<1x128xf32>
    %c2 = arith.constant 2 : index
    %c0_4 = arith.constant 0 : index
    %8 = vector.load %arg2[%c2, %c0_4] : memref<3x128xf32, #tpu.memory_space<vmem>>, vector<1x128xf32>
    %9 = vector.broadcast %5 : vector<64x1xf32> to vector<64x128xf32>
    %10 = vector.broadcast %6 : vector<1x128xf32> to vector<64x128xf32>
    %11 = arith.mulf %9, %10 : vector<64x128xf32>
    %12 = vector.broadcast %7 : vector<1x128xf32> to vector<64x128xf32>
    %13 = arith.addf %11, %12 : vector<64x128xf32>
    %14 = arith.mulf %13, %13 : vector<64x128xf32>
    %cst = arith.constant 0.000000e+00 : f32
    %15 = vector.broadcast %cst : f32 to vector<64x128xf32>
    %16 = arith.subf %15, %14 : vector<64x128xf32>
    %17 = math.exp %16 : vector<64x128xf32>
    %18 = vector.broadcast %8 : vector<1x128xf32> to vector<64x128xf32>
    %19 = arith.mulf %17, %18 : vector<64x128xf32>
    %c0_5 = arith.constant 0 : index
    %c0_6 = arith.constant 0 : index
    %20 = vector.load %arg3[%c0_5, %c0_6] : memref<64x128xf32, #tpu.memory_space<vmem>>, vector<64x128xf32>
    tpu.vector_store %arg3[%c0_5, %c0_6], %19 {strides = array<i32>} : memref<64x128xf32, #tpu.memory_space<vmem>>, vector<64x128xf32>,
    return
  }
  func.func @transform_0(%arg0: i32) -> (i32, i32) {
    %c0_i32 = arith.constant 0 : i32
    %c0_i32_0 = arith.constant 0 : i32
    return %arg0, %c0_i32 : i32, i32
  }
  func.func @transform_1(%arg0: i32) -> (i32, i32) {
    %c0_i32 = arith.constant 0 : i32
    %c0_i32_0 = arith.constant 0 : i32
    %c0_i32_1 = arith.constant 0 : i32
    return %c0_i32, %c0_i32_0 : i32, i32
  }
  func.func @transform_2(%arg0: i32) -> (i32, i32) {
    %c0_i32 = arith.constant 0 : i32
    %c0_i32_0 = arith.constant 0 : i32
    return %arg0, %c0_i32 : i32, i32
  }
}

</mosaic_0001>

<bundles_post_ra>
// kernel: tpu_custom_call.1
= control target key start
LH: loop header
LB: loop body
LE: loop exit
PB: predicated region body
PF: predicated region fallthrough
CT: control target
= control target key end

     0   :  { %7 = vsyncpa [#allocation3], 0  ;;  %s714_s0 = inlined_call_operand.vmem [shape: f32[128,3], index: 0, kind: input, shape index: {}]   ;;  %s715_s1 = inlined_call_operand.vmem [shape: f32[3,128], index: 1, kind: input, shape index: {}]   ;;  %s716_s2 = inlined_call_operand.hbm [shape: f32[128,128], index: 2, kind: output, shape index: {}]  }
   0x1   :  { %9 = vsyncpa [#allocation3 + $0x1], 0  ;;  %s576_s9 = smov 0   ;;  %s578_s10 = smov 0  }
   0x2   :  { %s580_s11 = smov 0   ;;  %s582_s12 = smov 0  }
   0x3 LB: > { %s597_s13 = sadd.s32 4294967295, %s554_s12   ;;  %s413_s14 = sadd.s32 4294967294, %s554_s12   ;;  %s554_s12 = sphi %s582_s12, %s722_s12   ;;  %s550_s11 = sphi %s580_s11, %s721_s11   ;;  %s546_s10 = sphi %s578_s10, %s720_s10   ;;  %s542_s9 = sphi %s576_s9, %s719_s9  }
   0x4   : > { %s601_s15 = sadd.s32 1, %s554_s12   ;;  %s69_s16 = sadd.s32 1, %s550_s11 }
   0x5   : > { %s66_s17 = ssub.s32 %s554_s12, %s601_s15  ;;  %p79_p0 = scmp.ne.s32.totalorder %s550_s11, %s546_s10 }
   0x6   : > { %p67_p1 = scmp.eq.s32.totalorder %s66_s17, 0  ;;  %p80_p2 = scmp.eq.s32.totalorder %s597_s13, 1 }
   0x7   : > { %p85_p3 = scmp.ne.s32.totalorder %s546_s10, %s542_s9  ;;  %p86_p4 = scmp.eq.s32.totalorder %s413_s14, 1 }
   0x8   : > { %s612_s18 = scalar_select %p67_p1, %s550_s11, %s69_s16  }
   0x9   : > { %p614_p5 = por %p80_p2, %p79_p0  ;;  %p618_p6 = por %p86_p4, %p85_p3 }
   0xa   : > { %p416_p7 = scmp.ge.s32.totalorder %s554_s12, 1  ;;  %p116_p8 = scmp.lt.s32.totalorder %s554_s12, 3 }
   0xc   : > { %p117_p9 = pnand %p416_p7, %p116_p8 }
   0xd   : > { %s418_s21 = sshll.u32 (!%p117_p9), %s597_s13, 3  ;;  %s556_s26 = smov (!%p117_p9), 1  }
   0xe   : > { %120 = sbr.rel (%p117_p9) target bundleno = 318 (0x13e), region = 28  ;;  %p139_p10 = scmp.lt.s32.totalorder (!%p117_p9), %s418_s21, 15 }
   0xf   : > { %s557_s27 = smov (!%p117_p9), 127   ;;  %s135_s4 = sand.u32 (!%p117_p9), 1, %s546_s10  }
  0x10   : > { %s417_s7 = sshll.u32 (!%p117_p9), %s135_s4, 6  ;;  %s425_s14 = sshll.u32 (!%p117_p9), %s597_s13, 6 }
  0x11   : > { %s657_s8 = scalar_lea.vmem (!%p117_p9), [#allocation2], %s417_s7  ;;  %s336_s13 = scalar_lea.sflag (!%p117_p9), [#allocation3], %s135_s4 }
  0x12   : > { %s512_s28 = scalar_lea.hbm (!%p117_p9), %s716_s2, 128 }
  0x13   : > { %s724_s21 = smov (!%p139_p10, %s418_s21), 15  ;;  %v558_v8 = vmov 1   ;;  %v631_v41 = vld [vmem:[%s715_s1] ss:$0 sm:$0xff]  ;;  %v636_v42 = vld [vmem:[%s715_s1 + $0x1] ss:$0 sm:$0xff] }
  0x14   : > { %s419_s22 = sshll.u32 %s724_s21, 3  ;;  %470 = vset.pattern.permute.xlu1 %v558_v8  ;;  %472 = vset.pattern.permute.xlu0 %v558_v8  ;;  %v650_v62 = vld [vmem:[%s715_s1 + $0x2] ss:$0 sm:$0xff]  ;;  %s347_s21 = scalar_lea.hbm %s716_s2, %s425_s14 }
  0x15   : > { %s142_s25 = scalar_lea.vmem %s714_s0, %s419_s22  ;;  %471 = vset.pattern.permute.xlu2 %v558_v8  ;;  %s348_s22 = sshll.u32 %s657_s8, 4  ;;  %s349_s22 = int_to_ptr.vmem [resolvable:$true] %s348_s22 }
  0x16   : > { %v147_v0 = vld [vmem:[%s142_s25 + $0x10] sm:$0xff]  ;;  %v145_v1 = vld [vmem:[%s142_s25] sm:$0xff]  ;;  %v148_v3 = vld [vmem:[%s142_s25 + $0x18] sm:$0xff]  ;;  %s350_s23 = sshll.u32 %s347_s21, 4  ;;  %s351_s23 = int_to_ptr.hbm [resolvable:$true] %s350_s23 }
  0x17   : > { %165 = vrot.lane.b32.xlu1 %v147_v0, %s556_s26  ;;  %161 = vrot.lane.b32.xlu0 %v145_v1, %s556_s26  ;;  %v149_v2 = vld [vmem:[%s142_s25 + $0x20] sm:$0xff]  ;;  %v146_v4 = vld [vmem:[%s142_s25 + $0x8] sm:$0xff]  ;;  %s506_s24 = sshra.s32 %s351_s23, 4  ;;  %s507_s24 = int_to_ptr.hbm [resolvable:$true] %s506_s24 }
  0x18   : > { %169 = vrot.lane.b32.xlu2 %v149_v2, %s556_s26  ;;  %v150_v5 = vld [vmem:[%s142_s25 + $0x28] sm:$0xff]  ;;  %v152_v6 = vld [vmem:[%s142_s25 + $0x38] sm:$0xff]  ;;  %v151_v7 = vld [vmem:[%s142_s25 + $0x30] sm:$0xff]  ;;  %s508_s25 = scalar_lea.hbm %s507_s24, 64  ;;  %p513_p0 = scmp.lt.s32.totalorder %s507_s24, %s716_s2 }
  0x19   : > { %p509_p11 = scmp.ne.s32.totalorder %s507_s24, %s508_s25  ;;  %p514_p1 = scmp.lt.s32.totalorder %s512_s28, %s508_s25 }
  0x1b   : > { %p510_p12 = pnand %p509_p11, %p614_p5  ;;  %p515_p2 = por %p514_p1, %p513_p0 }
  0x1d   : > { %p511_p13 = pneg %p510_p12 }
  0x1f   : > { %167 = vrot.lane.b32.xlu1 %v148_v3, %s556_s26  ;;  %163 = vrot.lane.b32.xlu0 %v146_v4, %s556_s26  ;;  %p516_p3 = pnand %p515_p2, %p511_p13 }
  0x20   : > { %171 = vrot.lane.b32.xlu2 %v150_v5, %s556_s26 }
  0x27   : > { %175 = vrot.lane.b32.xlu1 %v152_v6, %s556_s26  ;;  %173 = vrot.lane.b32.xlu0 %v151_v7, %s556_s26 }
  0x28   : > { %193 = vrot.lane.b32.xlu2 %v145_v1, %s557_s27 }
  0x2f   : > { %197 = vrot.lane.b32.xlu1 %v147_v0, %s557_s27  ;;  %195 = vrot.lane.b32.xlu0 %v146_v4, %s557_s27 }
  0x30   : > { %199 = vrot.lane.b32.xlu2 %v148_v3, %s557_s27 }
  0x37   : > { %203 = vrot.lane.b32.xlu1 %v150_v5, %s557_s27  ;;  %201 = vrot.lane.b32.xlu0 %v149_v2, %s557_s27 }
  0x38   : > { %205 = vrot.lane.b32.xlu2 %v151_v7, %s557_s27 }
  0x3f   : > { %207 = vrot.lane.b32.xlu0 %v152_v6, %s557_s27 }
  0x72   : > { %v170_v9 = vpop.permute.xlu2 %169 }
  0x73   : > { %v189_v29 = vmul.f32 %v170_v9, %v149_v2 }
  0x7a   : > { %v172_v10 = vpop.permute.xlu2 %171 }
  0x7b   : > { %v190_v30 = vmul.f32 %v172_v10, %v150_v5 }
  0x82   : > { %v194_v11 = vpop.permute.xlu2 %193 }
  0x89   : > { %v166_v12 = vpop.permute.xlu1 %165  ;;  %v162_v13 = vpop.permute.xlu0 %161 }
  0x8a   : > { %v185_v14 = vmul.f32 %v162_v13, %v145_v1  ;;  %v200_v19 = vpop.permute.xlu2 %199  ;;  %v187_v23 = vmul.f32 %v166_v12, %v147_v0 }
  0x8c   : > { %v217_v15 = vadd.f32 %v194_v11, %v185_v14 }
  0x8e   : > { %230 = vperm.xlu1 %470, %v217_v15  }
  0x91   : > { %v168_v16 = vpop.permute.xlu1 %167  ;;  %v164_v17 = vpop.permute.xlu0 %163 }
  0x92   : > { %v188_v18 = vmul.f32 %v168_v16, %v148_v3  ;;  %v186_v24 = vmul.f32 %v164_v17, %v146_v4  ;;  %v206_v36 = vpop.permute.xlu2 %205 }
  0x94   : > { %v220_v20 = vadd.f32 %v200_v19, %v188_v18 }
  0x96   : > { %245 = vperm.xlu1 %470, %v220_v20  }
  0x99   : > { %v176_v21 = vpop.permute.xlu1 %175  ;;  %v174_v22 = vpop.permute.xlu0 %173 }
  0x9a   : > { %v191_v35 = vmul.f32 %v174_v22, %v151_v7  ;;  %v192_v37 = vmul.f32 %v176_v21, %v152_v6 }
  0x9c   : > { %v223_v39 = vadd.f32 %v206_v36, %v191_v35 }
  0xa1   : > { %v198_v25 = vpop.permute.xlu1 %197  ;;  %v196_v26 = vpop.permute.xlu0 %195 }
  0xa2   : > { %v219_v27 = vadd.f32 %v198_v25, %v187_v23  ;;  %v218_v28 = vadd.f32 %v196_v26, %v186_v24 }
  0xa4   : > { %240 = vperm.xlu0 %472, %v219_v27   ;;  %235 = vperm.xlu2 %471, %v218_v28  }
  0xa9   : > { %v204_v31 = vpop.permute.xlu1 %203  ;;  %v202_v32 = vpop.permute.xlu0 %201 }
  0xaa   : > { %v222_v33 = vadd.f32 %v204_v31, %v190_v30  ;;  %v221_v34 = vadd.f32 %v202_v32, %v189_v29 }
  0xac   : > { %255 = vperm.xlu1 %470, %v222_v33   ;;  %250 = vperm.xlu2 %471, %v221_v34  }
  0xb1   : > { %v208_v38 = vpop.permute.xlu0 %207 }
  0xb2   : > { %v224_v40 = vadd.f32 %v208_v38, %v192_v37 }
  0xb4   : > { %260 = vperm.xlu2 %471, %v223_v39   ;;  %265 = vperm.xlu0 %472, %v224_v40  }
  0xfe   : > { %v236_v43 = vpop.permute.xlu2 %235 }
  0xff   : > { %v270_v44 = vmul.f32 %v631_v41, %v236_v43 }
 0x100   : > { %v231_v45 = vpop.permute.xlu1 %230 }
 0x101   : > { %v279_v46 = vadd.f32 %v636_v42, %v270_v44  ;;  %v269_v47 = vmul.f32 %v631_v41, %v231_v45 }
 0x103   : > { %v287_v48 = vmul.f32 %v279_v46, %v279_v46  ;;  %v278_v49 = vadd.f32 %v636_v42, %v269_v47 }
 0x105   : > { %v295_v50 = vsub.f32 0.0, %v287_v48  ;;  %v286_v51 = vmul.f32 %v278_v49, %v278_v49 }
 0x106   : > { %v251_v52 = vpop.permute.xlu2 %250 }
 0x107   : > { %v304_v53 = vmul.f32 1.442695, %v295_v50  ;;  %v294_v54 = vsub.f32 0.0, %v286_v51  ;;  %v273_v55 = vmul.f32 %v631_v41, %v251_v52 }
 0x108   : > { %v246_v56 = vpop.permute.xlu1 %245 }
 0x109   : > { %476 = vpow2.f32 %v304_v53  ;;  %v302_v57 = vmul.f32 1.442695, %v294_v54  ;;  %v282_v58 = vadd.f32 %v636_v42, %v273_v55  ;;  %v272_v59 = vmul.f32 %v631_v41, %v246_v56 }
 0x10b   : > { %478 = vpow2.f32 %v302_v57  ;;  %v290_v60 = vmul.f32 %v282_v58, %v282_v58  ;;  %v281_v61 = vadd.f32 %v636_v42, %v272_v59 }
 0x10d   : > { %v298_v63 = vsub.f32 0.0, %v290_v60  ;;  %v289_v0 = vmul.f32 %v281_v61, %v281_v61 }
 0x10e   : > { %v261_v1 = vpop.permute.xlu2 %260 }
 0x10f   : > { %v477_v2 = vpop.eup %476  ;;  %v310_v3 = vmul.f32 1.442695, %v298_v63  ;;  %v275_v4 = vmul.f32 %v631_v41, %v261_v1  ;;  %v297_v5 = vsub.f32 0.0, %v289_v0 }
 0x110   : > { %v320_v6 = vmul.f32 %v477_v2, %v650_v62 }
 0x111   : > { %v479_v7 = vpop.eup %478  ;;  %480 = vpow2.f32 %v310_v3  ;;  %v284_v8 = vadd.f32 %v636_v42, %v275_v4  ;;  %v308_v9 = vmul.f32 1.442695, %v297_v5 }
 0x112   : > { %328 = vst [vmem:[%s657_s8 + $0x8] sm:$0xff] %v320_v6  ;;  %v319_v10 = vmul.f32 %v479_v7, %v650_v62 }
 0x113   : > { %v292_v11 = vmul.f32 %v284_v8, %v284_v8  ;;  %482 = vpow2.f32 %v308_v9 }
 0x114   : > { %327 = vst [vmem:[%s657_s8] sm:$0xff] %v319_v10 }
 0x115   : > { %v300_v12 = vsub.f32 0.0, %v292_v11 }
 0x116   : > { %v241_v13 = vpop.permute.xlu0 %240 }
 0x117   : > { %v481_v14 = vpop.eup %480  ;;  %v314_v15 = vmul.f32 1.442695, %v300_v12  ;;  %v271_v16 = vmul.f32 %v631_v41, %v241_v13 }
 0x118   : > { %v323_v17 = vmul.f32 %v481_v14, %v650_v62 }
 0x119   : > { %v483_v18 = vpop.eup %482  ;;  %484 = vpow2.f32 %v314_v15  ;;  %v280_v19 = vadd.f32 %v636_v42, %v271_v16 }
 0x11a   : > { %331 = vst [vmem:[%s657_s8 + $0x20] sm:$0xff] %v323_v17  ;;  %v322_v20 = vmul.f32 %v483_v18, %v650_v62 }
 0x11b   : > { %v288_v21 = vmul.f32 %v280_v19, %v280_v19 }
 0x11c   : > { %330 = vst [vmem:[%s657_s8 + $0x18] sm:$0xff] %v322_v20 }
 0x11d   : > { %v296_v22 = vsub.f32 0.0, %v288_v21 }
 0x11e   : > { %v256_v23 = vpop.permute.xlu1 %255 }
 0x11f   : > { %v485_v24 = vpop.eup %484  ;;  %v306_v25 = vmul.f32 1.442695, %v296_v22  ;;  %v274_v26 = vmul.f32 %v631_v41, %v256_v23 }
 0x120   : > { %v325_v27 = vmul.f32 %v485_v24, %v650_v62 }
 0x121   : > { %486 = vpow2.f32 %v306_v25  ;;  %v283_v28 = vadd.f32 %v636_v42, %v274_v26 }
 0x122   : > { %333 = vst [vmem:[%s657_s8 + $0x30] sm:$0xff] %v325_v27 }
 0x123   : > { %v291_v29 = vmul.f32 %v283_v28, %v283_v28 }
 0x125   : > { %v299_v30 = vsub.f32 0.0, %v291_v29 }
 0x126   : > { %v266_v31 = vpop.permute.xlu0 %265 }
 0x127   : > { %v487_v32 = vpop.eup %486  ;;  %v312_v33 = vmul.f32 1.442695, %v299_v30  ;;  %v276_v34 = vmul.f32 %v631_v41, %v266_v31 }
 0x128   : > { %v321_v35 = vmul.f32 %v487_v32, %v650_v62 }
 0x129   : > { %488 = vpow2.f32 %v312_v33  ;;  %v285_v36 = vadd.f32 %v636_v42, %v276_v34 }
 0x12a   : > { %329 = vst [vmem:[%s657_s8 + $0x10] sm:$0xff] %v321_v35 }
 0x12b   : > { %v293_v37 = vmul.f32 %v285_v36, %v285_v36 }
 0x12d   : > { %v301_v38 = vsub.f32 0.0, %v293_v37 }
 0x12f   : > { %v489_v39 = vpop.eup %488  ;;  %v316_v40 = vmul.f32 1.442695, %v301_v38 }
 0x130   : > { %v324_v43 = vmul.f32 %v489_v39, %v650_v62 }
 0x131   : > { %490 = vpow2.f32 %v316_v40 }
 0x132   : > { %332 = vst [vmem:[%s657_s8 + $0x28] sm:$0xff] %v324_v43 }
 0x137   : > { %v491_v41 = vpop.eup %490 }
 0x138   : > { %v326_v42 = vmul.f32 %v491_v41, %v650_v62 }
 0x13a   : > { %334 = vst [vmem:[%s657_s8 + $0x38] sm:$0xff] %v326_v42 }
 0x13b   : > { %519 = shalt.err (!%p516_p3)
}
 0x13c   : > { %s559_s3 = smov 128   ;;  %s560_s4 = smov 8  }
 0x13d   : > { %426 = dma.vmem_to_hbm [thread:$0]  (%p614_p5), %s349_s22, 1024, %s351_s23, %s336_s13, %s559_s3, %s559_s3, %s560_s4  }
 0x13e PF: > { %p432_p4 = scmp.ge.s32.totalorder %s554_s12, 2  ;;  %s365_s5 = sand.u32 1, %s542_s9  }
 0x13f   : > { %s366_s6 = scalar_lea.sflag [#allocation3], %s365_s5 }
 0x140   : > { %p429_p7 = pnand %p432_p4, %p618_p6 }
 0x142   : > { %p430_p8 = pneg %p429_p7 }
 0x144   : > { %537 = dma.done.wait (%p430_p8), %s366_s6, 1024  }
 0x145   : > { %539 = vsyncadd (%p430_p8), %s366_s6, 4294966272  ;;  %p12_p9 = scmp.ge.s32.totalorder %s601_s15, 4   ;;  %s719_s9 = smov %s546_s10 }
 0x146   : > { %s720_s10 = smov %s550_s11  ;;  %s721_s11 = smov %s612_s18 }
 0x147   : > { %s722_s12 = smov %s601_s15  ;;  %14 = sbr.rel (!%p12_p9) target bundleno = 3 (0x3), region = 63 }
 0x14c   :  { %372 = vsyncpa [#allocation3], 1 }
 0x14d   :  { %374 = vsyncpa [#allocation3 + $0x1], 1 }

</bundles_post_ra>
